<compile_context>
chip_gen: v5e
topology: v5e:2x2
jax: 0.10.0
libtpu: 0.0.40
codegen_flags: <defaults>
</compile_context>

<pallas_src>
import functools
import math

import jax
import jax.numpy as jnp
from jax.experimental import pallas as pl
from jax.experimental.pallas import tpu as pltpu


# --------------------------------------------------------------------------
# Small helpers
# --------------------------------------------------------------------------
def _pick_tile(dim, target, granule):
    """Largest tile <= target that divides dim and is a multiple of granule.
    Falls back to the full dim (always legal for BlockSpec)."""
    if dim <= target:
        return dim
    t = target - (target % granule)
    while t >= granule:
        if dim % t == 0:
            return t
        t -= granule
    return dim


def _sublane_granule(dtype):
    """Sublane granule per dtype: 8 (f32), 16 (bf16), 32 (int8/fp8)."""
    return {4: 8, 2: 16, 1: 32}.get(jnp.dtype(dtype).itemsize, 8)


def _ensure_two_parallel(batch, dim, tile, granule):
    """v7x has 2 TensorCores sharing the parallel grid axes; make sure the
    parallel extent is >= 2 when the batch alone does not provide it."""
    if batch * (dim // tile) >= 2 or dim < 2 * granule:
        return tile
    return _pick_tile(dim, dim // 2, granule)


def _vmem_limit_bytes():
    """~2/3 of physical VMEM, capped at 96 MiB; safe 48 MiB fallback."""
    default = 48 * 1024 * 1024
    try:
        info = pltpu.get_tpu_info()
        cap = int(getattr(info, "vmem_capacity_bytes", 0) or 0)
        if cap > 0:
            return min((cap * 2) // 3, 96 * 1024 * 1024)
    except Exception:
        pass
    return default


def _layer_norm(y, gamma, beta, eps=1e-5):
    y = y.astype(jnp.float32)
    mean = jnp.mean(y, axis=-1, keepdims=True)
    var = jnp.mean((y - mean) ** 2, axis=-1, keepdims=True)
    return (y - mean) * jax.lax.rsqrt(var + eps) * gamma + beta


# --------------------------------------------------------------------------
# Kernel 1: fused QKV projection (full-width matmuls, resident weights).
# --------------------------------------------------------------------------
def _qkv_proj_kernel(x_ref, wq_ref, bq_ref, wk_ref, bk_ref, wv_ref, bv_ref,
                     q_ref, k_ref, v_ref, *, scale):
    x = x_ref[...].astype(wq_ref.dtype)                      # (tr, D)
    q = jnp.dot(x, wq_ref[...], preferred_element_type=jnp.float32) + bq_ref[...]
    q_ref[...] = (q * scale).astype(q_ref.dtype)             # scale folded into q
    k = jnp.dot(x, wk_ref[...], preferred_element_type=jnp.float32) + bk_ref[...]
    k_ref[...] = k.astype(k_ref.dtype)
    v = jnp.dot(x, wv_ref[...], preferred_element_type=jnp.float32) + bv_ref[...]
    v_ref[...] = v.astype(v_ref.dtype)


def _qkv_proj(x, wq, bq, wk, bk, wv, bv, scale, tr, compute_dtype, vmem_limit):
    B, S, D = x.shape
    grid = (B, S // tr)

    x_spec = pl.BlockSpec((None, tr, D), lambda b, r: (b, r, 0))
    w_spec = pl.BlockSpec((D, D), lambda b, r: (0, 0))        # resident, DMA'd once
    b_spec = pl.BlockSpec((1, D), lambda b, r: (0, 0))
    o_spec = pl.BlockSpec((None, tr, D), lambda b, r: (b, r, 0))

    out_sd = jax.ShapeDtypeStruct((B, S, D), compute_dtype)
    flops = 2 * 3 * B * S * D * D
    item = jnp.dtype(compute_dtype).itemsize
    bytes_acc = (x.dtype.itemsize * B * S * D
                 + item * (3 * B * S * D + 3 * D * D) + 4 * 3 * D)
    return pl.pallas_call(
        functools.partial(_qkv_proj_kernel, scale=scale),
        out_shape=(out_sd, out_sd, out_sd),
        grid_spec=pltpu.PrefetchScalarGridSpec(
            num_scalar_prefetch=0,
            grid=grid,
            in_specs=[x_spec, w_spec, b_spec, w_spec, b_spec, w_spec, b_spec],
            out_specs=[o_spec, o_spec, o_spec],
        ),
        compiler_params=pltpu.CompilerParams(
            dimension_semantics=("parallel", "parallel"),
            vmem_limit_bytes=vmem_limit,
        ),
        cost_estimate=pl.CostEstimate(flops=flops, transcendentals=0,
                                      bytes_accessed=bytes_acc),
    )(x, wq, bq, wk, bk, wv, bv)


# --------------------------------------------------------------------------
# Kernel 2: flash attention (online softmax over kv tiles, heads via static
#           lane slices) + single full-depth out-proj + residual + LayerNorm1.
# --------------------------------------------------------------------------
def _attn_kernel(x_ref, q_ref, k_ref, v_ref, wo_ref, bo_ref, g1_ref, b1_ref,
                 y_ref, m_sc, l_sc, acc_sc, *, n_heads):
    ki = pl.program_id(2)
    tq, D = q_ref.shape
    hd = D // n_heads
    cd = q_ref.dtype
    bf16_math = jnp.dtype(cd) != jnp.dtype(jnp.float32)

    @pl.when(ki == 0)
    def _():
        m_sc[...] = jnp.full(m_sc.shape, -jnp.inf, dtype=jnp.float32)
        l_sc[...] = jnp.zeros(l_sc.shape, dtype=jnp.float32)
        acc_sc[...] = jnp.zeros(acc_sc.shape, dtype=jnp.float32)

    # Per-head online softmax. Heads are static lane slices of the dense
    # (tq, D)/(tkv, D) tiles; the context accumulates directly into the
    # concatenated-head lane layout of acc_sc (tq, D).
    for h in range(n_heads):
        sl = slice(h * hd, (h + 1) * hd)
        q_h = q_ref[:, sl]                                    # (tq, hd), scaled
        k_h = k_ref[:, sl]                                    # (tkv, hd)
        v_h = v_ref[:, sl]                                    # (tkv, hd)

        s = jax.lax.dot_general(q_h, k_h, (((1,), (1,)), ((), ())),
                                preferred_element_type=jnp.float32)  # (tq, tkv)
        m_prev = m_sc[:, h:h + 1]
        m_new = jnp.maximum(m_prev, jnp.max(s, axis=-1, keepdims=True))
        alpha = jnp.exp(m_prev - m_new)
        if bf16_math:
            # bf16 exp rides the v6e/v7x EUP bf16 path; sums/accum stay f32.
            p = jnp.exp((s - m_new).astype(cd))
            p_sum = jnp.sum(p.astype(jnp.float32), axis=-1, keepdims=True)
        else:
            p = jnp.exp(s - m_new)
            p_sum = jnp.sum(p, axis=-1, keepdims=True)
        l_sc[:, h:h + 1] = alpha * l_sc[:, h:h + 1] + p_sum
        pv = jnp.dot(p.astype(cd), v_h, preferred_element_type=jnp.float32)
        acc_sc[:, sl] = alpha * acc_sc[:, sl] + pv
        m_sc[:, h:h + 1] = m_new

    @pl.when(ki == pl.num_programs(2) - 1)
    def _():
        # Normalize each head's lanes, then ONE (tq, D) @ (D, D) out-proj.
        for h in range(n_heads):
            sl = slice(h * hd, (h + 1) * hd)
            l_h = l_sc[:, h:h + 1]
            inv = pl.reciprocal(l_h, approx=True)
            inv = inv * (2.0 - l_h * inv)                     # one Newton step
            acc_sc[:, sl] = acc_sc[:, sl] * inv
        ctx = acc_sc[...]                                     # (tq, D) f32
        attn_out = jnp.dot(ctx.astype(cd), wo_ref[...],
                           preferred_element_type=jnp.float32) + bo_ref[...]
        y = x_ref[...].astype(jnp.float32) + attn_out
        y_ref[...] = _layer_norm(y, g1_ref[...], b1_ref[...]).astype(y_ref.dtype)


def _attention(x, q, k, v, wo, bo, g1, b1, n_heads, tq, tkv, compute_dtype,
               vmem_limit):
    B, S, D = x.shape
    hd = D // n_heads
    grid = (B, S // tq, S // tkv)

    x_spec = pl.BlockSpec((None, tq, D), lambda b, qi, ki: (b, qi, 0))
    q_spec = pl.BlockSpec((None, tq, D), lambda b, qi, ki: (b, qi, 0))
    kv_spec = pl.BlockSpec((None, tkv, D), lambda b, qi, ki: (b, ki, 0))
    # TODO(synk): on v7x, single-buffer these resident operands with
    # pipeline_mode=pl.Buffered(1) to reclaim VMEM once the API is pinned.
    wo_spec = pl.BlockSpec((D, D), lambda b, qi, ki: (0, 0))
    vec_spec = pl.BlockSpec((1, D), lambda b, qi, ki: (0, 0))
    y_spec = pl.BlockSpec((None, tq, D), lambda b, qi, ki: (b, qi, 0))

    item = jnp.dtype(compute_dtype).itemsize
    flops = 4 * B * n_heads * S * S * hd + 2 * B * S * D * D
    transc = B * n_heads * S * S
    bytes_acc = (x.dtype.itemsize * B * S * D
                 + item * (4 * B * S * D + D * D) + 4 * 4 * D)
    return pl.pallas_call(
        functools.partial(_attn_kernel, n_heads=n_heads),
        out_shape=jax.ShapeDtypeStruct((B, S, D), compute_dtype),
        grid_spec=pltpu.PrefetchScalarGridSpec(
            num_scalar_prefetch=0,
            grid=grid,
            in_specs=[x_spec, q_spec, kv_spec, kv_spec, wo_spec, vec_spec,
                      vec_spec, vec_spec],
            out_specs=y_spec,
            scratch_shapes=[
                pltpu.VMEM((tq, n_heads), jnp.float32),   # running max per head
                pltpu.VMEM((tq, n_heads), jnp.float32),   # running sum per head
                pltpu.VMEM((tq, D), jnp.float32),         # dense context accum
            ],
        ),
        compiler_params=pltpu.CompilerParams(
            dimension_semantics=("parallel", "parallel", "arbitrary"),
            vmem_limit_bytes=vmem_limit,
        ),
        cost_estimate=pl.CostEstimate(flops=flops, transcendentals=transc,
                                      bytes_accessed=bytes_acc),
    )(x, q, k, v, wo, bo, g1, b1)


# --------------------------------------------------------------------------
# Kernel 3: MLP (resident or chunk-streamed weights) + residual + LayerNorm2.
# --------------------------------------------------------------------------
def _mlp_kernel(y_ref, w1_ref, bf1_ref, w2_ref, bf2_ref, g2_ref, b2_ref,
                o_ref, acc_sc):
    hk = pl.program_id(2)

    @pl.when(hk == 0)
    def _():
        acc_sc[...] = jnp.zeros(acc_sc.shape, dtype=jnp.float32)

    y = y_ref[...]                                               # (tr, D)
    h1 = jnp.dot(y, w1_ref[...], preferred_element_type=jnp.float32) + bf1_ref[...]
    h1 = jax.nn.gelu(h1, approximate=False)        # exact erf, matches F.gelu
    acc_sc[...] += jnp.dot(h1.astype(w2_ref.dtype), w2_ref[...],
                           preferred_element_type=jnp.float32)

    @pl.when(hk == pl.num_programs(2) - 1)
    def _():
        out = y.astype(jnp.float32) + acc_sc[...] + bf2_ref[...]
        o_ref[...] = _layer_norm(out, g2_ref[...], b2_ref[...]).astype(o_ref.dtype)


def _mlp(y, w1, bf1, w2, bf2, g2, b2, tr, th, out_dtype, vmem_limit):
    B, S, D = y.shape
    Hd = w1.shape[1]
    grid = (B, S // tr, Hd // th)

    y_spec = pl.BlockSpec((None, tr, D), lambda b, r, hk: (b, r, 0))
    w1_spec = pl.BlockSpec((D, th), lambda b, r, hk: (0, hk))
    bf1_spec = pl.BlockSpec((1, th), lambda b, r, hk: (0, hk))
    w2_spec = pl.BlockSpec((th, D), lambda b, r, hk: (hk, 0))
    vec_spec = pl.BlockSpec((1, D), lambda b, r, hk: (0, 0))
    o_spec = pl.BlockSpec((None, tr, D), lambda b, r, hk: (b, r, 0))

    item = jnp.dtype(y.dtype).itemsize
    flops = 4 * B * S * D * Hd
    transc = B * S * Hd
    bytes_acc = item * (B * S * D + 2 * D * Hd) + 4 * B * S * D
    return pl.pallas_call(
        _mlp_kernel,
        out_shape=jax.ShapeDtypeStruct((B, S, D), out_dtype),
        grid_spec=pltpu.PrefetchScalarGridSpec(
            num_scalar_prefetch=0,
            grid=grid,
            in_specs=[y_spec, w1_spec, bf1_spec, w2_spec, vec_spec, vec_spec,
                      vec_spec],
            out_specs=o_spec,
            scratch_shapes=[pltpu.VMEM((tr, D), jnp.float32)],
        ),
        compiler_params=pltpu.CompilerParams(
            dimension_semantics=("parallel", "parallel", "arbitrary"),
            vmem_limit_bytes=vmem_limit,
        ),
        cost_estimate=pl.CostEstimate(flops=flops, transcendentals=transc,
                                      bytes_accessed=bytes_acc),
    )(y, w1, bf1, w2, bf2, g2, b2)


# --------------------------------------------------------------------------
# Wrapper: full EncoderLayer forward (eval mode, mask=None).
# --------------------------------------------------------------------------
def encoder_layer(x, params, n_heads, *, compute_dtype=jnp.bfloat16,
                  tq=256, tkv=256, tr=256, th=None):
    B, S, D = x.shape
    assert D % n_heads == 0, "d_model must be divisible by n_heads"
    hd = D // n_heads
    Hd = params["w1"].shape[1]
    cd = jnp.dtype(compute_dtype)
    item = cd.itemsize
    sub = _sublane_granule(cd)

    # Tile selection: dtype-aware sublane granule; 128-lane granule for the
    # kv (lane) axis; keep >= 2 steps on the parallel axes for v7x megacore.
    tr = _pick_tile(S, tr, sub)
    tq = _pick_tile(S, tq, sub)
    tkv = _pick_tile(S, tkv, 128)
    tr = _ensure_two_parallel(B, S, tr, sub)
    tq = _ensure_two_parallel(B, S, tq, sub)

    # MLP: keep w1/w2 fully resident when they fit a conservative budget
    # (also safe on v7x's 64 MiB VMEM); otherwise stream 128-lane chunks.
    if th is None:
        th = Hd if 2 * D * Hd * item <= 24 * 1024 * 1024 else 1024
    th = _pick_tile(Hd, th, 128)

    vmem_limit = _vmem_limit_bytes()
    scale = 1.0 / math.sqrt(hd)
    f32 = jnp.float32

    # Matmul operands in the compute dtype (native bf16 MXU path); biases and
    # LayerNorm parameters stay f32 (they join f32 accumulators / statistics).
    wq, wk, wv, wo = (params[k].astype(cd) for k in ("wq", "wk", "wv", "wo"))
    w1, w2 = params["w1"].astype(cd), params["w2"].astype(cd)
    bq, bk, bv, bo = (params[k].astype(f32) for k in ("bq", "bk", "bv", "bo"))
    g1, b1, g2, b2 = (params[k].astype(f32) for k in ("g1", "b1", "g2", "b2"))
    bf1, bf2 = params["bf1"].astype(f32), params["bf2"].astype(f32)

    q, k, v = _qkv_proj(x, wq, bq, wk, bk, wv, bv, scale, tr, cd, vmem_limit)
    y = _attention(x, q, k, v, wo, bo, g1, b1, n_heads, tq, tkv, cd, vmem_limit)
    # TODO(synk): optional attention mask and train-mode dropout are not
    # implemented (module default mask=None; dropout is identity in eval).
    return _mlp(y, w1, bf1, w2, bf2, g2, b2, tr, th, x.dtype, vmem_limit)


def make_params(key, d_model, n_heads, hidden_dim):
    ks = jax.random.split(key, 12)
    s = 0.05
    return {
        # Linear weights stored pre-transposed: (in, out), so y = x @ W + b
        "wq": jax.random.normal(ks[0], (d_model, d_model), jnp.float32) * s,
        "bq": jax.random.normal(ks[1], (1, d_model), jnp.float32) * s,
        "wk": jax.random.normal(ks[2], (d_model, d_model), jnp.float32) * s,
        "bk": jax.random.normal(ks[3], (1, d_model), jnp.float32) * s,
        "wv": jax.random.normal(ks[4], (d_model, d_model), jnp.float32) * s,
        "bv": jax.random.normal(ks[5], (1, d_model), jnp.float32) * s,
        "wo": jax.random.normal(ks[6], (d_model, d_model), jnp.float32) * s,
        "bo": jax.random.normal(ks[7], (1, d_model), jnp.float32) * s,
        "g1": jnp.ones((1, d_model), jnp.float32),
        "b1": jnp.zeros((1, d_model), jnp.float32),
        "w1": jax.random.normal(ks[8], (d_model, hidden_dim), jnp.float32) * s,
        "bf1": jax.random.normal(ks[9], (1, hidden_dim), jnp.float32) * s,
        "w2": jax.random.normal(ks[10], (hidden_dim, d_model), jnp.float32) * s,
        "bf2": jax.random.normal(ks[11], (1, d_model), jnp.float32) * s,
        "g2": jnp.ones((1, d_model), jnp.float32),
        "b2": jnp.zeros((1, d_model), jnp.float32),
    }


def encoder_layer_ref(x, p, n_heads):
    """Pure-JAX reference mirroring the PyTorch forward (eval mode, no mask)."""
    B, S, D = x.shape
    hd = D // n_heads
    q = x @ p["wq"] + p["bq"][0]
    k = x @ p["wk"] + p["bk"][0]
    v = x @ p["wv"] + p["bv"][0]
    q = q.reshape(B, S, n_heads, hd).transpose(0, 2, 1, 3)
    k = k.reshape(B, S, n_heads, hd).transpose(0, 2, 1, 3)
    v = v.reshape(B, S, n_heads, hd).transpose(0, 2, 1, 3)
    scores = jnp.einsum("bhqd,bhkd->bhqk", q, k) / jnp.sqrt(jnp.float32(hd))
    attn = jax.nn.softmax(scores, axis=-1)
    ctx = jnp.einsum("bhqk,bhkd->bhqd", attn, v).transpose(0, 2, 1, 3).reshape(B, S, D)
    attn_out = ctx @ p["wo"] + p["bo"][0]

    def ln(y, g, b):
        m = jnp.mean(y, axis=-1, keepdims=True)
        var = jnp.mean((y - m) ** 2, axis=-1, keepdims=True)
        return (y - m) / jnp.sqrt(var + 1e-5) * g[0] + b[0]

    y = ln(x + attn_out, p["g1"], p["b1"])
    h1 = jax.nn.gelu(y @ p["w1"] + p["bf1"][0], approximate=False)
    mlp_out = h1 @ p["w2"] + p["bf2"][0]
    return ln(y + mlp_out, p["g2"], p["b2"])


if __name__ == "__main__":
    B, S, D, H, NH = 2, 8, 32, 64, 4
    key = jax.random.PRNGKey(0)
    kx, kp = jax.random.split(key)
    x = jax.random.normal(kx, (B, S, D), jnp.float32)
    params = make_params(kp, D, NH, H)

    ref = encoder_layer_ref(x, params, NH)

    # f32 compute path: tight numeric check.
    out32 = jax.block_until_ready(
        encoder_layer(x, params, NH, compute_dtype=jnp.float32))
    assert out32.shape == (B, S, D)
    err32 = float(jnp.max(jnp.abs(out32 - ref)))
    assert err32 < 1e-3, f"f32 path max err {err32}"

    # bf16-intermediate (default / production) path: loose check.
    out16 = jax.block_until_ready(
        encoder_layer(x, params, NH, compute_dtype=jnp.bfloat16))
    assert out16.shape == (B, S, D)
    err16 = float(jnp.max(jnp.abs(out16.astype(jnp.float32) - ref)))
    assert err16 < 5e-2, f"bf16 path max err {err16}"

    print("KERNEL_OK")
</pallas_src>

<mosaic_0001>
module attributes {stable_mosaic.version = 11 : i64} {
  func.func @_qkv_proj_kernel(%arg0: i32, %arg1: i32, %arg2: memref<1x8x32xf32, #tpu.memory_space<vmem>>, %arg3: memref<32x32xf32, #tpu.memory_space<vmem>>, %arg4: memref<1x32xf32, #tpu.memory_space<vmem>>, %arg5: memref<32x32xf32, #tpu.memory_space<vmem>>, %arg6: memref<1x32xf32, #tpu.memory_space<vmem>>, %arg7: memref<32x32xf32, #tpu.memory_space<vmem>>, %arg8: memref<1x32xf32, #tpu.memory_space<vmem>>, %arg9: memref<1x8x32xf32, #tpu.memory_space<vmem>>, %arg10: memref<1x8x32xf32, #tpu.memory_space<vmem>>, %arg11: memref<1x8x32xf32, #tpu.memory_space<vmem>>) attributes {dimension_semantics = [#tpu.dimension_semantics<parallel>, #tpu.dimension_semantics<parallel>], iteration_bounds = array<i64: 2, 1>, scalar_prefetch = 0 : i64, scratch_operands = 0 : i64, tpu.core_type = #tpu.core_type<tc>, window_params = [{transform_indices = @transform_0, window_bounds = array<i64: 1, 8, 32>}, {pipeline_mode = #tpu.pipeline_mode<synchronous>, transform_indices = @transform_1, window_bounds = array<i64: 32, 32>}, {pipeline_mode = #tpu.pipeline_mode<synchronous>, transform_indices = @transform_2, window_bounds = array<i64: 1, 32>}, {pipeline_mode = #tpu.pipeline_mode<synchronous>, transform_indices = @transform_3, window_bounds = array<i64: 32, 32>}, {pipeline_mode = #tpu.pipeline_mode<synchronous>, transform_indices = @transform_4, window_bounds = array<i64: 1, 32>}, {pipeline_mode = #tpu.pipeline_mode<synchronous>, transform_indices = @transform_5, window_bounds = array<i64: 32, 32>}, {pipeline_mode = #tpu.pipeline_mode<synchronous>, transform_indices = @transform_6, window_bounds = array<i64: 1, 32>}, {transform_indices = @transform_7, window_bounds = array<i64: 1, 8, 32>}, {transform_indices = @transform_8, window_bounds = array<i64: 1, 8, 32>}, {transform_indices = @transform_9, window_bounds = array<i64: 1, 8, 32>}]} {
    %c0 = arith.constant 0 : index
    %c0_0 = arith.constant 0 : index
    %c0_1 = arith.constant 0 : index
    %0 = vector.load %arg2[%c0, %c0_0, %c0_1] : memref<1x8x32xf32, #tpu.memory_space<vmem>>, vector<1x8x32xf32>
    %1 = vector.shape_cast %0 : vector<1x8x32xf32> to vector<8x32xf32>
    %c0_2 = arith.constant 0 : index
    %c0_3 = arith.constant 0 : index
    %2 = vector.load %arg3[%c0_2, %c0_3] : memref<32x32xf32, #tpu.memory_space<vmem>>, vector<32x32xf32>
    %cst = arith.constant dense<0.000000e+00> : vector<8x32xf32>
    %3 = tpu.matmul %1, %2, %cst {dimension_numbers = #tpu.dot_dimension_numbers<[1], [0], [0], [1], [0, 0, 1, 1], [], []>} : vector<8x32xf32>, vector<32x32xf32>, vector<8x32xf32> -> vector<8x32xf32>
    %c0_4 = arith.constant 0 : index
    %c0_5 = arith.constant 0 : index
    %4 = vector.load %arg4[%c0_4, %c0_5] : memref<1x32xf32, #tpu.memory_space<vmem>>, vector<1x32xf32>
    %5 = vector.broadcast %4 : vector<1x32xf32> to vector<8x32xf32>
    %6 = arith.addf %3, %5 : vector<8x32xf32>
    %cst_6 = arith.constant 0.353553385 : f32
    %7 = vector.broadcast %cst_6 : f32 to vector<8x32xf32>
    %8 = arith.mulf %6, %7 : vector<8x32xf32>
    %c0_7 = arith.constant 0 : index
    %c0_8 = arith.constant 0 : index
    %c0_9 = arith.constant 0 : index
    %9 = vector.load %arg9[%c0_7, %c0_8, %c0_9] : memref<1x8x32xf32, #tpu.memory_space<vmem>>, vector<1x8x32xf32>
    %10 = vector.shape_cast %9 : vector<1x8x32xf32> to vector<8x32xf32>
    %11 = vector.shape_cast %8 : vector<8x32xf32> to vector<1x8x32xf32>
    tpu.vector_store %arg9[%c0_7, %c0_8, %c0_9], %11 {strides = array<i32>} : memref<1x8x32xf32, #tpu.memory_space<vmem>>, vector<1x8x32xf32>,
    %c0_10 = arith.constant 0 : index
    %c0_11 = arith.constant 0 : index
    %12 = vector.load %arg5[%c0_10, %c0_11] : memref<32x32xf32, #tpu.memory_space<vmem>>, vector<32x32xf32>
    %cst_12 = arith.constant dense<0.000000e+00> : vector<8x32xf32>
    %13 = tpu.matmul %1, %12, %cst_12 {dimension_numbers = #tpu.dot_dimension_numbers<[1], [0], [0], [1], [0, 0, 1, 1], [], []>} : vector<8x32xf32>, vector<32x32xf32>, vector<8x32xf32> -> vector<8x32xf32>
    %c0_13 = arith.constant 0 : index
    %c0_14 = arith.constant 0 : index
    %14 = vector.load %arg6[%c0_13, %c0_14] : memref<1x32xf32, #tpu.memory_space<vmem>>, vector<1x32xf32>
    %15 = vector.broadcast %14 : vector<1x32xf32> to vector<8x32xf32>
    %16 = arith.addf %13, %15 : vector<8x32xf32>
    %c0_15 = arith.constant 0 : index
    %c0_16 = arith.constant 0 : index
    %c0_17 = arith.constant 0 : index
    %17 = vector.load %arg10[%c0_15, %c0_16, %c0_17] : memref<1x8x32xf32, #tpu.memory_space<vmem>>, vector<1x8x32xf32>
    %18 = vector.shape_cast %17 : vector<1x8x32xf32> to vector<8x32xf32>
    %19 = vector.shape_cast %16 : vector<8x32xf32> to vector<1x8x32xf32>
    tpu.vector_store %arg10[%c0_15, %c0_16, %c0_17], %19 {strides = array<i32>} : memref<1x8x32xf32, #tpu.memory_space<vmem>>, vector<1x8x32xf32>,
    %c0_18 = arith.constant 0 : index
    %c0_19 = arith.constant 0 : index
    %20 = vector.load %arg7[%c0_18, %c0_19] : memref<32x32xf32, #tpu.memory_space<vmem>>, vector<32x32xf32>
    %cst_20 = arith.constant dense<0.000000e+00> : vector<8x32xf32>
    %21 = tpu.matmul %1, %20, %cst_20 {dimension_numbers = #tpu.dot_dimension_numbers<[1], [0], [0], [1], [0, 0, 1, 1], [], []>} : vector<8x32xf32>, vector<32x32xf32>, vector<8x32xf32> -> vector<8x32xf32>
    %c0_21 = arith.constant 0 : index
    %c0_22 = arith.constant 0 : index
    %22 = vector.load %arg8[%c0_21, %c0_22] : memref<1x32xf32, #tpu.memory_space<vmem>>, vector<1x32xf32>
    %23 = vector.broadcast %22 : vector<1x32xf32> to vector<8x32xf32>
    %24 = arith.addf %21, %23 : vector<8x32xf32>
    %c0_23 = arith.constant 0 : index
    %c0_24 = arith.constant 0 : index
    %c0_25 = arith.constant 0 : index
    %25 = vector.load %arg11[%c0_23, %c0_24, %c0_25] : memref<1x8x32xf32, #tpu.memory_space<vmem>>, vector<1x8x32xf32>
    %26 = vector.shape_cast %25 : vector<1x8x32xf32> to vector<8x32xf32>
    %27 = vector.shape_cast %24 : vector<8x32xf32> to vector<1x8x32xf32>
    tpu.vector_store %arg11[%c0_23, %c0_24, %c0_25], %27 {strides = array<i32>} : memref<1x8x32xf32, #tpu.memory_space<vmem>>, vector<1x8x32xf32>,
    return
  }
  func.func @transform_0(%arg0: i32, %arg1: i32) -> (i32, i32, i32) {
    %c0_i32 = arith.constant 0 : i32
    %c0_i32_0 = arith.constant 0 : i32
    return %arg0, %arg1, %c0_i32 : i32, i32, i32
  }
  func.func @transform_1(%arg0: i32, %arg1: i32) -> (i32, i32) {
    %c0_i32 = arith.constant 0 : i32
    %c0_i32_0 = arith.constant 0 : i32
    %c0_i32_1 = arith.constant 0 : i32
    return %c0_i32, %c0_i32_0 : i32, i32
  }
  func.func @transform_2(%arg0: i32, %arg1: i32) -> (i32, i32) {
    %c0_i32 = arith.constant 0 : i32
    %c0_i32_0 = arith.constant 0 : i32
    %c0_i32_1 = arith.constant 0 : i32
    return %c0_i32, %c0_i32_0 : i32, i32
  }
  func.func @transform_3(%arg0: i32, %arg1: i32) -> (i32, i32) {
    %c0_i32 = arith.constant 0 : i32
    %c0_i32_0 = arith.constant 0 : i32
    %c0_i32_1 = arith.constant 0 : i32
    return %c0_i32, %c0_i32_0 : i32, i32
  }
  func.func @transform_4(%arg0: i32, %arg1: i32) -> (i32, i32) {
    %c0_i32 = arith.constant 0 : i32
    %c0_i32_0 = arith.constant 0 : i32
    %c0_i32_1 = arith.constant 0 : i32
    return %c0_i32, %c0_i32_0 : i32, i32
  }
  func.func @transform_5(%arg0: i32, %arg1: i32) -> (i32, i32) {
    %c0_i32 = arith.constant 0 : i32
    %c0_i32_0 = arith.constant 0 : i32
    %c0_i32_1 = arith.constant 0 : i32
    return %c0_i32, %c0_i32_0 : i32, i32
  }
  func.func @transform_6(%arg0: i32, %arg1: i32) -> (i32, i32) {
    %c0_i32 = arith.constant 0 : i32
    %c0_i32_0 = arith.constant 0 : i32
    %c0_i32_1 = arith.constant 0 : i32
    return %c0_i32, %c0_i32_0 : i32, i32
  }
  func.func @transform_7(%arg0: i32, %arg1: i32) -> (i32, i32, i32) {
    %c0_i32 = arith.constant 0 : i32
    %c0_i32_0 = arith.constant 0 : i32
    return %arg0, %arg1, %c0_i32 : i32, i32, i32
  }
  func.func @transform_8(%arg0: i32, %arg1: i32) -> (i32, i32, i32) {
    %c0_i32 = arith.constant 0 : i32
    %c0_i32_0 = arith.constant 0 : i32
    return %arg0, %arg1, %c0_i32 : i32, i32, i32
  }
  func.func @transform_9(%arg0: i32, %arg1: i32) -> (i32, i32, i32) {
    %c0_i32 = arith.constant 0 : i32
    %c0_i32_0 = arith.constant 0 : i32
    return %arg0, %arg1, %c0_i32 : i32, i32, i32
  }
}

</mosaic_0001>

<bundles_post_ra>
// kernel: tpu_custom_call.1
= control target key start
LH: loop header
LB: loop body
LE: loop exit
PB: predicated region body
PF: predicated region fallthrough
CT: control target
= control target key end

     0   :  { %s1485_s0 = inlined_call_operand.hbm [shape: f32[2,8,32], index: 0, kind: input, shape index: {}]   ;;  %s1486_s1 = inlined_call_operand.hbm [shape: f32[32,32], index: 1, kind: input, shape index: {}]   ;;  %s1487_s2 = inlined_call_operand.vmem [shape: f32[1,32], index: 2, kind: input, shape index: {}]   ;;  %s1488_s3 = inlined_call_operand.hbm [shape: f32[32,32], index: 3, kind: input, shape index: {}]   ;;  %s1489_s4 = inlined_call_operand.vmem [shape: f32[1,32], index: 4, kind: input, shape index: {}]   ;;  %s1490_s5 = inlined_call_operand.hbm [shape: f32[32,32], index: 5, kind: input, shape index: {}]   ;;  %s1491_s6 = inlined_call_operand.vmem [shape: f32[1,32], index: 6, kind: input, shape index: {}]   ;;  %s1492_s7 = inlined_call_operand.hbm [shape: f32[2,8,32], index: 7, kind: output, shape index: {0}]   ;;  %s1493_s8 = inlined_call_operand.hbm [shape: f32[2,8,32], index: 8, kind: output, shape index: {1}]   ;;  %s1494_s9 = inlined_call_operand.hbm [shape: f32[2,8,32], index: 9, kind: output, shape index: {2}]  }
   0x1   :  { %1499 = sst [smem:[#allocation21_spill]] %s1485_s0 }
   0x2   :  { %1500 = sst [smem:[#allocation22_spill]] %s1486_s1 }
   0x3   :  { %1501 = sst [smem:[#allocation23_spill]] %s1487_s2 }
   0x4   :  { %1502 = sst [smem:[#allocation24_spill]] %s1488_s3 }
   0x5   :  { %1503 = sst [smem:[#allocation25_spill]] %s1490_s5 }
   0x6   :  { %15 = vsyncpa [#allocation3], 0 }
   0x7   :  { %17 = vsyncpa [#allocation3 + $0x1], 0 }
   0x8   :  { %18 = vsyncpa [#allocation6], 0 }
   0x9   :  { %19 = vsyncpa [#allocation9], 0 }
   0xa   :  { %20 = vsyncpa [#allocation4], 0 }
   0xb   :  { %22 = vsyncpa [#allocation4 + $0x1], 0 }
   0xc   :  { %23 = vsyncpa [#allocation12], 0 }
   0xd   :  { %25 = vsyncpa [#allocation12 + $0x1], 0  ;;  %s1226_s30 = smov 0   ;;  %s1228_s10 = smov 0  }
   0xe   :  { %s1230_s11 = smov 0   ;;  %s1232_s12 = smov 0  }
   0xf   :  { %s1234_s13 = smov 0   ;;  %s1236_s14 = smov 0  }
  0x10 LB: > { %s1257_s15 = sadd.s32 4294967295, %s1169_s14   ;;  %p765_p0 = scmp.ge.s32.totalorder %s1169_s14, 1  ;;  %s1169_s14 = sphi %s1236_s14, %s31_s14   ;;  %s1165_s13 = sphi %s1234_s13, %s1526_s13   ;;  %s1161_s12 = sphi %s1232_s12, %s1525_s12   ;;  %s1157_s11 = sphi %s1230_s11, %s1524_s11   ;;  %s1153_s10 = sphi %s1228_s10, %s1523_s10   ;;  %s1149_s30 = sphi %s1226_s30, %s1522_s30  }
  0x11   : > { %p66_p1 = scmp.eq.s32.totalorder %s1257_s15, 0  ;;  %p286_p2 = scmp.lt.s32.totalorder %s1169_s14, 3 }
  0x12   : > { %s1504_s1 = sld [smem:[#allocation22_spill]]  ;;  %s1171_s20 = smov [#allocation5]  }
  0x13   : > { %p1265_p3 = pnand %p765_p0, %p286_p2  ;;  %s299_s21 = sshll.u32 %s1171_s20, 4  ;;  %s300_s21 = int_to_ptr.vmem [resolvable:$true] %s299_s21 }
  0x14   : > { %p769_p6 = scmp.ge.s32.totalorder %s1169_s14, 2  ;;  %s1507_s3 = sld [smem:[#allocation24_spill]] }
  0x15   : > { %p811_p4 = pneg %p1265_p3  ;;  %s1172_s26 = smov 128  }
  0x16   : > { %s1173_s27 = smov 8   ;;  %s1174_s28 = smov [#allocation7]  }
  0x17   : > { %p1273_p5 = pnand %p811_p4, %p66_p1  ;;  %s316_s29 = sshll.u32 %s1174_s28, 4  ;;  %s317_s29 = int_to_ptr.vmem [resolvable:$true] %s316_s29 }
  0x18   : > { %s297_s18 = sshll.u32 %s1504_s1, 4  ;;  %s1508_s5 = sld [smem:[#allocation25_spill]]  ;;  %s298_s18 = int_to_ptr.hbm [resolvable:$true] %s297_s18 }
  0x19   : > { %814 = dma.hbm_to_vmem [thread:$0]  (!%p1273_p5), %s298_s18, 512, %s300_s21, [#allocation6], %s1172_s26, %s1172_s26, %s1173_s27  }
  0x1a   : > { %s314_s25 = sshll.u32 %s1507_s3, 4  ;;  %s1175_s23 = smov [#allocation8]   ;;  %s315_s25 = int_to_ptr.hbm [resolvable:$true] %s314_s25 }
  0x1b   : > { %817 = dma.hbm_to_vmem [thread:$0]  (!%p1273_p5), %s315_s25, 512, %s317_s29, [#allocation6], %s1172_s26, %s1172_s26, %s1173_s27  }
  0x1c   : > { %s333_s24 = sshll.u32 %s1175_s23, 4  ;;  %s1495_s18 = sadd.s32 4294967294, %s1169_s14   ;;  %s334_s24 = int_to_ptr.vmem [resolvable:$true] %s333_s24 }
  0x1d   : > { %s43_s21 = sadd.s32 1, %s1165_s13  ;;  %s52_s28 = sadd.s32 1, %s1157_s11 }
  0x1e   : > { %s331_s20 = sshll.u32 %s1508_s5, 4  ;;  %p45_p7 = scmp.ge.s32.totalorder %s43_s21, 2  ;;  %s332_s20 = int_to_ptr.hbm [resolvable:$true] %s331_s20 }
  0x1f   : > { %820 = dma.hbm_to_vmem [thread:$0]  (!%p1273_p5), %s332_s20, 512, %s334_s24, [#allocation9], %s1172_s26, %s1172_s26, %s1173_s27  }
  0x20   : > { %p59_p8 = scmp.ne.s32.totalorder %s1157_s11, %s1153_s10  ;;  %p60_p9 = scmp.eq.s32.totalorder %s1169_s14, 0 }
  0x21   : > { %p65_p10 = scmp.ne.s32.totalorder %s1153_s10, %s1149_s30  ;;  %s1528_s21 = smov (%p45_p7, %s43_s21), 0 }
  0x22   : > { %1509 = sst [smem:[#allocation19_spill]] %s1528_s21  ;;  %p1300_p11 = por %p60_p9, %p59_p8 }
  0x23   : > { %p1306_p12 = por %p66_p1, %p65_p10  ;;  %s47_s26 = ssub.s32 %s1165_s13, %s1528_s21 }
  0x24   : > { %p217_p13 = scmp.eq.s32.totalorder %s1257_s15, 1  ;;  %p50_p0 = scmp.eq.s32.totalorder %s47_s26, 0 }
  0x25   : > { %p223_p2 = scmp.eq.s32.totalorder %s1495_s18, 1  ;;  %p838_p5 = scmp.lt.s32.totalorder %s1169_s14, 2 }
  0x26   : > { %p1315_p4 = por %p217_p13, %p59_p8  ;;  %s350_s17 = sand.u32 1, %s1157_s11  }
  0x27   : > { %s1321_s29 = scalar_select %p50_p0, %s1157_s11, %s52_s28  }
  0x28   : > { %p1323_p7 = por %p223_p2, %p65_p10  ;;  %s770_s20 = sshll.u32 %s350_s17, 3 }
  0x29   : > { %s771_s23 = sshll.u32 %s1165_s13, 3  ;;  %s1514_s0 = sld [smem:[#allocation21_spill]] }
  0x2a   : > { %s354_s3 = scalar_lea.vmem [#allocation2], %s770_s20  ;;  %p822_p8 = pnand %p838_p5, %p1300_p11 }
  0x2b   : > { %s363_s18 = sshll.u32 %s354_s3, 4  ;;  %s351_s28 = scalar_lea.sflag [#allocation3], %s350_s17  ;;  %s364_s18 = int_to_ptr.vmem [resolvable:$true] %s363_s18 }
  0x2d   : > { %372 = sbr.rel (%p1265_p3) target bundleno = 225 (0xe1), region = 48 }
  0x2f   : > { %s359_s26 = scalar_lea.hbm %s1514_s0, %s771_s23 }
  0x30   : > { %s361_s5 = sshll.u32 %s359_s26, 4  ;;  %s362_s5 = int_to_ptr.hbm [resolvable:$true] %s361_s5 }
  0x31   : > { %824 = dma.hbm_to_vmem [thread:$0]  (!%p822_p8), %s362_s5, 128, %s364_s18, %s351_s28  }
  0x32   : > { %s1337_s21 = sand.u32 1, %s1153_s10  }
  0x33   : > { %s1340_s1 = sshll.u32 %s1337_s21, 3  ;;  %s375_s3 = scalar_lea.sflag [#allocation3], %s1337_s21 }
  0x34   : > { %s378_s20 = scalar_lea.vmem [#allocation2], %s1340_s1 }
  0x35   : > { %1128 = dma.done.wait (%p1306_p12), %s375_s3, 128  }
  0x36   : > { %1130 = vsyncadd (%p1306_p12), %s375_s3, 4294967168 }
  0x37   : > { %1132 = dma.done.wait (%p66_p1), [#allocation6], 1024  }
  0x38   : > { %1134 = vsyncadd (%p66_p1), [#allocation6], 4294966272 }
  0x39   : > { %1136 = dma.done.wait (%p66_p1), [#allocation9], 512  }
  0x3a   : > { %1138 = vsyncadd (%p66_p1), [#allocation9], 4294966784  ;;  %v506_v0 = vld [vmem:[#allocation8 + $0x18] sm:$0xff]  ;;  %v505_v1 = vld [vmem:[#allocation8 + $0x10] sm:$0xff]  ;;  %vm448_vm0 = vcmask 261120   ;;  %s786_s5 = sshll.u32 %s1161_s12, 3 }
  0x3b   : > { %v443_v2 = vld [vmem:[#allocation5 + $0x18] sm:$0xff]  ;;  %523 = vmatpush.msra.mxu2 %v506_v0  ;;  %v442_v4 = vld [vmem:[#allocation5 + $0x10] sm:$0xff]  ;;  %v504_v5 = vld [vmem:[#allocation8 + $0x8] sm:$0xff]  ;;  %s537_s19 = sand.u32 1, %s1257_s15   ;;  %s569_s22 = scalar_lea.hbm %s1493_s8, %s786_s5 }
  0x3c   : > { %464 = vmatpush.msra.mxu0 %v443_v2  ;;  %v477_v3 = vld [vmem:[#allocation7 + $0x18] sm:$0xff]  ;;  %v476_v6 = vld [vmem:[#allocation7 + $0x10] sm:$0xff]  ;;  %v441_v7 = vld [vmem:[#allocation5 + $0x8] sm:$0xff]  ;;  %s1515_s2 = sld [smem:[#allocation23_spill]]  ;;  %s431_s24 = scalar_lea.vmem [#allocation11], %s1340_s1 }
  0x3d   : > { %494 = vmatpush.msra.mxu1 %v477_v3  ;;  %524 = vmatpush.msra.mxu2 %v505_v1  ;;  %v475_v8 = vld [vmem:[#allocation7 + $0x8] sm:$0xff]  ;;  %v503_v9 = vld [vmem:[#allocation8] sm:$0xff]  ;;  %v439_v11 = vld [vmem:[%s378_s20] sm:$0xff]  ;;  %s1368_s26 = sshll.u32 %s431_s24, 4  ;;  %s554_s20 = scalar_lea.hbm %s1492_s7, %s786_s5  ;;  %s572_s26 = int_to_ptr.vmem [resolvable:$true] %s1368_s26 }
  0x3e   : > { %465 = vmatpush.msra.mxu0 %v442_v4  ;;  %v440_v10 = vld [vmem:[#allocation5] sm:$0xff]  ;;  %v897_v14 = vld [vmem:[%s1489_s4] ss:$0 sm:$0xff]  ;;  %s584_s0 = scalar_lea.hbm %s1494_s9, %s786_s5  ;;  %s1380_s17 = sshll.u32 %s569_s22, 4  ;;  %s574_s17 = int_to_ptr.hbm [resolvable:$true] %s1380_s17 }
  0x3f   : > { %495 = vmatpush.msra.mxu1 %v476_v6  ;;  %525 = vmatpush.msra.mxu2 %v504_v5  ;;  %v474_v12 = vld [vmem:[#allocation7] sm:$0xff]  ;;  %s424_s23 = scalar_lea.vmem [#allocation10], %s1340_s1  ;;  %s1387_s28 = sshll.u32 %s554_s20, 4  ;;  %v898_v20 = vld [vmem:[%s1491_s6] ss:$0 sm:$0xff]  ;;  %s559_s28 = int_to_ptr.hbm [resolvable:$true] %s1387_s28 }
  0x40   : > { %466 = vmatpush.msra.mxu0 %v441_v7  ;;  %s1497_s3 = scalar_lea.vmem [#allocation13], %s1340_s1  ;;  %s1394_s5 = sshll.u32 %s584_s0, 4  ;;  %s589_s5 = int_to_ptr.hbm [resolvable:$true] %s1394_s5 }
  0x41   : > { %496 = vmatpush.msra.mxu1 %v475_v8  ;;  %526 = vmatpush.msra.mxu2 %v503_v9  ;;  %s1392_s12 = sshll.u32 %s1497_s3, 4  ;;  %s1405_s20 = scalar_lea.sflag [#allocation12], %s537_s19  ;;  %s587_s12 = int_to_ptr.vmem [resolvable:$true] %s1392_s12 }
  0x42   : > { %467 = vmatpush.msra.mxu0 %v440_v10  ;;  %782 = vmatmul.msk.f32.vlgmr.msra.gmra.mxu2 %vm448_vm0, %v439_v11  ;;  %v896_v13 = vld [vmem:[%s1515_s2] ss:$0 sm:$0xff]  ;;  %s1385_s2 = sshll.u32 %s424_s23, 4  ;;  %s1033_s0 = sshra.s32 %s574_s17, 4  ;;  %s1034_s0 = int_to_ptr.hbm [resolvable:$true] %s1033_s0 }
  0x43   : > { %780 = vmatmul.msk.f32.vlgmr.msra.gmra.mxu0 %vm448_vm0, %v439_v11  ;;  %497 = vmatpush.msra.mxu1 %v474_v12  ;;  %1516 = sst [smem:[#allocation20_spill]] %s1385_s2  ;;  %s1035_s18 = scalar_lea.hbm %s1034_s0, 8 }
  0x44   : > { %781 = vmatmul.msk.f32.vlgmr.msra.gmra.mxu1 %vm448_vm0, %v439_v11  ;;  %p1036_p1 = scmp.ne.s32.totalorder %s1034_s0, %s1035_s18  ;;  %s1039_s15 = scalar_lea.hbm %s1493_s8, 16 }
  0x45   : > { %p1040_p10 = scmp.lt.s32.totalorder %s1034_s0, %s1493_s8  ;;  %p1041_p11 = scmp.lt.s32.totalorder %s1039_s15, %s1035_s18 }
  0x46   : > { %p1037_p3 = pnand %p1036_p1, %p1315_p4 }
  0x47   : > { %p1042_p12 = por %p1041_p11, %p1040_p10 }
  0x48   : > { %p1038_p9 = pneg %p1037_p3 }
  0x4a   : > { %p1043_p13 = pnand %p1042_p12, %p1038_p9 }
  0xc0   : > { %v469_v15 = vpop.f32.mrf.mxu0 }
  0xc1   : > { %v470_v16 = vadd.f32 %v896_v13, %v469_v15  ;;  %v499_v17 = vpop.f32.mrf.mxu1 }
  0xc2   : > { %v500_v19 = vadd.f32 %v897_v14, %v499_v17 }
  0xc3   : > { %v472_v18 = vmul.f32 0.35355338, %v470_v16 }
  0xc4   : > { %502 = vst.msk [vmem:[%s431_s24] sm:$0xff] %vm448_vm0, %v500_v19 }
  0xc5   : > { %v528_v21 = vpop.f32.mrf.mxu2 }
  0xc6   : > { %1046 = shalt.err (!%p1043_p13)
}
  0xc7   : > { %806 = dma.vmem_to_hbm [thread:$0]  (%p1315_p4), %s572_s26, 128, %s574_s17, %s1405_s20   ;;  %473 = vst.msk [vmem:[%s424_s23] sm:$0xff] %vm448_vm0, %v472_v18  ;;  %v529_v22 = vadd.f32 %v898_v20, %v528_v21 }
  0xc8   : > { %s533_s2 = scalar_lea.sflag [#allocation4], %s1337_s21  ;;  %s1061_s19 = sshra.s32 %s559_s28, 4  ;;  %s1062_s19 = int_to_ptr.hbm [resolvable:$true] %s1061_s19 }
  0xc9   : > { %s1063_s24 = scalar_lea.hbm %s1062_s19, 8  ;;  %s1067_s18 = scalar_lea.hbm %s1492_s7, 16 }
  0xca   : > { %p1064_p0 = scmp.ne.s32.totalorder %s1062_s19, %s1063_s24  ;;  %p1068_p8 = scmp.lt.s32.totalorder %s1062_s19, %s1492_s7 }
  0xcb   : > { %p1069_p1 = scmp.lt.s32.totalorder %s1067_s18, %s1063_s24 }
  0xcc   : > { %p1065_p2 = pnand %p1064_p0, %p1315_p4 }
  0xcd   : > { %p1070_p3 = por %p1069_p1, %p1068_p8 }
  0xce   : > { %p1066_p5 = pneg %p1065_p2 }
  0xd0   : > { %p1071_p9 = pnand %p1070_p3, %p1066_p5 }
  0xd2   : > { %1074 = shalt.err (!%p1071_p9)
}
  0xd3   : > { %s1517_s21 = sld [smem:[#allocation20_spill]]  ;;  %s1519_s17 = scalar_lea.vmem [#allocation13], %s1340_s1 }
  0xd4   : > { %531 = vst.msk [vmem:[%s1519_s17] sm:$0xff] %vm448_vm0, %v529_v22  ;;  %s1089_s23 = sshra.s32 %s589_s5, 4  ;;  %s1095_s3 = scalar_lea.hbm %s1494_s9, 16  ;;  %s1090_s23 = int_to_ptr.hbm [resolvable:$true] %s1089_s23 }
  0xd5   : > { %s1091_s15 = scalar_lea.hbm %s1090_s23, 8  ;;  %p1096_p13 = scmp.lt.s32.totalorder %s1090_s23, %s1494_s9 }
  0xd6   : > { %p1092_p10 = scmp.ne.s32.totalorder %s1090_s23, %s1091_s15  ;;  %p1097_p0 = scmp.lt.s32.totalorder %s1095_s3, %s1091_s15 }
  0xd8   : > { %p1093_p11 = pnand %p1092_p10, %p1315_p4  ;;  %p1098_p2 = por %p1097_p0, %p1096_p13 }
  0xd9   : > { %s1518_s26 = int_to_ptr.vmem [resolvable:$true] %s1517_s21 }
  0xda   : > { %805 = dma.vmem_to_hbm [thread:$0]  (%p1315_p4), %s1518_s26, 128, %s559_s28, %s533_s2  }
  0xdb   : > { %p1094_p12 = pneg %p1093_p11 }
  0xdd   : > { %p1099_p5 = pnand %p1098_p2, %p1094_p12 }
  0xdf   : > { %1102 = shalt.err (!%p1099_p5)
}
  0xe0   : > { %807 = dma.vmem_to_hbm [thread:$0]  (%p1315_p4), %s587_s12, 128, %s589_s5, %s1405_s20  }
  0xe1 PF: > { %s600_s1 = sand.u32 1, %s1149_s30   ;;  %p826_p8 = pnand %p769_p6, %p1323_p7 }
  0xe2   : > { %s601_s28 = scalar_lea.sflag [#allocation4], %s600_s1 }
  0xe3   : > { %p827_p1 = pneg %p826_p8 }
  0xe5   : > { %1140 = dma.done.wait (%p827_p1), %s601_s28, 128  }
  0xe6   : > { %1142 = vsyncadd (%p827_p1), %s601_s28, 4294967168  ;;  %s1520_s27 = sadd.s32 4294967294, %s1169_s14  }
  0xe7   : > { %s610_s2 = sand.u32 1, %s1520_s27  }
  0xe8   : > { %s611_s25 = scalar_lea.sflag [#allocation12], %s610_s2 }
  0xe9   : > { %1144 = dma.done.wait (%p827_p1), %s611_s25, 256  }
  0xea   : > { %1146 = vsyncadd (%p827_p1), %s611_s25, 4294967040  ;;  %s31_s14 = sadd.s32 1, %s1169_s14   ;;  %s1521_s16 = sld [smem:[#allocation19_spill]] }
  0xeb   : > { %p28_p4 = scmp.ge.s32.totalorder %s31_s14, 4   ;;  %s1522_s30 = smov %s1153_s10 }
  0xec   : > { %s1523_s10 = smov %s1157_s11  ;;  %s1524_s11 = smov %s1321_s29 }
  0xed   : > { %s1525_s12 = smov %s1165_s13  ;;  %30 = sbr.rel (!%p28_p4) target bundleno = 16 (0x10), region = 137 }
  0xf0   : > { %s1526_s13 = smov %s1521_s16 }
  0xf2   :  { %627 = vsyncpa [#allocation3], 1 }
  0xf3   :  { %629 = vsyncpa [#allocation3 + $0x1], 1 }
  0xf4   :  { %630 = vsyncpa [#allocation6], 1 }
  0xf5   :  { %631 = vsyncpa [#allocation9], 1 }
  0xf6   :  { %632 = vsyncpa [#allocation4], 1 }
  0xf7   :  { %634 = vsyncpa [#allocation4 + $0x1], 1 }
  0xf8   :  { %635 = vsyncpa [#allocation12], 1 }
  0xf9   :  { %637 = vsyncpa [#allocation12 + $0x1], 1 }

</bundles_post_ra>
